<compile_context>
chip_gen: v5e
topology: v5e:2x2
jax: 0.10.0
libtpu: 0.0.40
codegen_flags: <defaults>
</compile_context>

<pallas_src>
import jax
import jax.numpy as jnp
import numpy as np
from jax.experimental import pallas as pl
from jax.experimental.pallas import tpu as pltpu


def _round_up(n, m):
    return ((n + m - 1) // m) * m


# ---------------------------------------------------------------------------
# Pallas kernel (built as a closure over the static problem sizes)
# ---------------------------------------------------------------------------
def _make_kernel(M, Cf, Cc, Cn, used, pad_width):
    Ct = Cf + Cc + Cn

    def kernel(feat_ref, pooled_ref,
               wfe_ref, bfe_ref,          # feature extractor Linear (bf16 W, f32 b)
               wg1_ref, bg1_ref,          # fused gating hidden layer (3 MLPs packed)
               wg2_ref, bg2_ref,          # fused gating logit layer (block-diagonal)
               whead_ref, bhead_ref,      # all member-model heads packed
               out_ref):                  # (tb, pad_width) lane-dense slab
        f32, bf16 = jnp.float32, jnp.bfloat16

        # feature_extractor: Linear(3*8*8 -> F) + ReLU  (Dropout == identity)
        gf = jnp.dot(feat_ref[...].astype(bf16), wfe_ref[...],
                     preferred_element_type=f32) + bfe_ref[...]
        gf = jnp.maximum(gf, 0.0)

        # fused task-specific gating: one matmul for all three hidden layers,
        # one block-diagonal matmul for all three logit layers.
        h = jnp.dot(gf.astype(bf16), wg1_ref[...],
                    preferred_element_type=f32) + bg1_ref[...]
        h = jnp.maximum(h, 0.0)
        logits = jnp.dot(h.astype(bf16), wg2_ref[...],
                         preferred_element_type=f32) + bg2_ref[...]

        def softmax(z):
            zm = jnp.max(z, axis=1, keepdims=True)
            e = jnp.exp(z - zm)
            # single reciprocal + multiply (EUP); exact for metadata fidelity
            return e * pl.reciprocal(jnp.sum(e, axis=1, keepdims=True), approx=False)

        food_w = softmax(logits[:, 0:M])
        cuis_w = softmax(logits[:, M:2 * M])
        nutr_w = softmax(logits[:, 2 * M:3 * M])

        # all member-model heads (every model, every task) in one matmul;
        # layout per model m: [food(Cf) | cuisine(Cc) | nutrition(Cn)]
        preds = jnp.dot(pooled_ref[...].astype(bf16), whead_ref[...],
                        preferred_element_type=f32) + bhead_ref[...]

        def combine(w, start, width):
            # f_adaptive(x) = sum_m g_m(x) * f_m(x); stays entirely in vregs
            acc = w[:, 0:1] * preds[:, start:start + width]
            for m in range(1, M):
                off = m * Ct + start
                acc = acc + w[:, m:m + 1] * preds[:, off:off + width]
            return acc

        food = combine(food_w, 0, Cf)
        cuis = combine(cuis_w, Cf, Cc)
        nutr = combine(nutr_w, Cf + Cc, Cn)

        # per-row predictive entropy of the food gating weights (clip + log,
        # matching ModelUncertainty.predictive_entropy); batch mean in wrapper
        eps = 1e-8
        pcl = jnp.clip(food_w, eps, 1.0 - eps)
        ent = -jnp.sum(pcl * jnp.log(pcl), axis=1, keepdims=True)

        parts = [food, cuis, nutr, food_w, cuis_w, nutr_w, ent]
        pad = pad_width - used
        if pad > 0:
            parts.append(jnp.zeros((food.shape[0], pad), f32))
        out_ref[...] = jnp.concatenate(parts, axis=1)   # one unmasked store

    return kernel


# ---------------------------------------------------------------------------
# Wrapper: pooling/flatten glue, packed-weight pallas_call, output split
# ---------------------------------------------------------------------------
def adaptive_ensemble_forward(x, packed, *, num_models, num_food, num_cuisine,
                              num_nutrition):
    B, C, Himg, Wimg = x.shape
    assert Himg % 8 == 0 and Wimg % 8 == 0
    M, Cf, Cc, Cn = num_models, num_food, num_cuisine, num_nutrition
    Ct = Cf + Cc + Cn

    # AdaptiveAvgPool2d(8) + Flatten (NCHW, torch Flatten order) and the
    # member-model global average pool — pure reshape/mean glue.
    xp = x.reshape(B, C, 8, Himg // 8, 8, Wimg // 8).mean(axis=(3, 5))
    feat = xp.reshape(B, C * 64)          # (B, 192) gating features
    pooled = x.mean(axis=(2, 3))          # (B, C)   member-head input

    FEAT_IN = feat.shape[1]
    F = packed["Wfe"].shape[1]
    Hh = packed["bg1"].shape[1] // 3

    used = Ct + 3 * M + 1
    PAD = _round_up(used, 128)            # lane-dense single output slab

    # Batch tiling: whole batch for small B; 256-row tiles (multiple of 8) for
    # large B so the "parallel" grid axis shards across v7x's two TensorCores
    # while double-buffered blocks stay far below the 32 MiB scoped-VMEM
    # default (64 MiB physical on v7x, 128 MiB on v5e/v6e).
    tb = 256 if (B >= 512 and B % 256 == 0) else B
    grid = (B // tb,)

    kernel = _make_kernel(M, Cf, Cc, Cn, used, PAD)

    def full(shape):
        return pl.BlockSpec(shape, lambda i: (0, 0))

    in_specs = [
        pl.BlockSpec((tb, FEAT_IN), lambda i: (i, 0)),
        pl.BlockSpec((tb, C), lambda i: (i, 0)),
        full(packed["Wfe"].shape), full(packed["bfe"].shape),
        full(packed["Wg1"].shape), full(packed["bg1"].shape),
        full(packed["Wg2"].shape), full(packed["bg2"].shape),
        full(packed["Whead"].shape), full(packed["bhead"].shape),
    ]
    out_specs = pl.BlockSpec((tb, PAD), lambda i: (i, 0))

    args = (feat, pooled,
            packed["Wfe"], packed["bfe"],
            packed["Wg1"], packed["bg1"],
            packed["Wg2"], packed["bg2"],
            packed["Whead"], packed["bhead"])

    flops = int(2 * B * (FEAT_IN * F + F * 3 * Hh + 3 * Hh * 3 * M + C * M * Ct)
                + 12 * B * PAD)
    bytes_accessed = int(sum(int(np.prod(a.shape)) * a.dtype.itemsize for a in args)
                         + B * PAD * 4)
    cost = pl.CostEstimate(flops=flops, transcendentals=int(4 * B * M),
                           bytes_accessed=bytes_accessed)

    slab = pl.pallas_call(
        kernel,
        out_shape=jax.ShapeDtypeStruct((B, PAD), jnp.float32),
        grid=grid,
        in_specs=in_specs,
        out_specs=out_specs,
        compiler_params=pltpu.CompilerParams(dimension_semantics=("parallel",)),
        cost_estimate=cost,
    )(*args)

    o = 0
    food = slab[:, o:o + Cf]; o += Cf
    cuis = slab[:, o:o + Cc]; o += Cc
    nutr = slab[:, o:o + Cn]; o += Cn
    food_w = slab[:, o:o + M]; o += M
    cuis_w = slab[:, o:o + M]; o += M
    nutr_w = slab[:, o:o + M]; o += M
    ent = jnp.mean(slab[:, o])            # scalar mean gating entropy (metadata)
    return food, cuis, nutr, food_w, cuis_w, nutr_w, ent


# ---------------------------------------------------------------------------
# Deterministic parameter construction + packing
# ---------------------------------------------------------------------------
def init_params(key, in_ch=3, feat_dim=128, hidden=64, num_models=3,
                num_food=16, num_cuisine=8, num_nutrition=4):
    def lin(k, fan_in, fan_out, scale=0.05):
        kw, kb = jax.random.split(k)
        return (scale * jax.random.normal(kw, (fan_in, fan_out), jnp.float32),
                scale * jax.random.normal(kb, (1, fan_out), jnp.float32))

    keys = jax.random.split(key, 4 + 3 * num_models)
    Wfe, bfe = lin(keys[0], in_ch * 8 * 8, feat_dim)

    def gating(k):
        k1, k2 = jax.random.split(k)
        W1, b1 = lin(k1, feat_dim, hidden)
        W2, b2 = lin(k2, hidden, num_models)
        return {"W1": W1, "b1": b1, "W2": W2, "b2": b2}

    models = []
    for i in range(num_models):
        kf, kc, kn = keys[4 + 3 * i], keys[5 + 3 * i], keys[6 + 3 * i]
        Wf, bf = lin(kf, in_ch, num_food)
        Wc, bc = lin(kc, in_ch, num_cuisine)
        Wn, bn = lin(kn, in_ch, num_nutrition)
        models.append({"Wf": Wf, "bf": bf, "Wc": Wc, "bc": bc, "Wn": Wn, "bn": bn})

    return {"Wfe": Wfe, "bfe": bfe, "food_g": gating(keys[1]),
            "cuis_g": gating(keys[2]), "nutr_g": gating(keys[3]),
            "models": models}


def pack_params(raw):
    """Pack the raw per-task / per-model weights into the kernel's fused,
    bf16 slabs (done once at param-construction time)."""
    bf16, f32 = jnp.bfloat16, jnp.float32
    fg, cg, ng = raw["food_g"], raw["cuis_g"], raw["nutr_g"]
    Hh = fg["W2"].shape[0]
    M = fg["W2"].shape[1]

    Wg1 = jnp.concatenate([fg["W1"], cg["W1"], ng["W1"]], axis=1).astype(bf16)
    bg1 = jnp.concatenate([fg["b1"], cg["b1"], ng["b1"]], axis=1)

    Wg2 = jnp.zeros((3 * Hh, 3 * M), f32)
    for t, g in enumerate((fg, cg, ng)):           # block-diagonal logit weight
        Wg2 = Wg2.at[t * Hh:(t + 1) * Hh, t * M:(t + 1) * M].set(g["W2"])
    Wg2 = Wg2.astype(bf16)
    bg2 = jnp.concatenate([fg["b2"], cg["b2"], ng["b2"]], axis=1)

    Whead = jnp.concatenate(
        [jnp.concatenate([m["Wf"], m["Wc"], m["Wn"]], axis=1) for m in raw["models"]],
        axis=1).astype(bf16)
    bhead = jnp.concatenate(
        [jnp.concatenate([m["bf"], m["bc"], m["bn"]], axis=1) for m in raw["models"]],
        axis=1)

    return {"Wfe": raw["Wfe"].astype(bf16), "bfe": raw["bfe"],
            "Wg1": Wg1, "bg1": bg1, "Wg2": Wg2, "bg2": bg2,
            "Whead": Whead, "bhead": bhead}


# ---------------------------------------------------------------------------
# Pure-JAX reference (original module structure, same bf16 weight rounding)
# ---------------------------------------------------------------------------
def reference_forward(x, raw):
    def bfr(a):
        return a.astype(jnp.bfloat16).astype(jnp.float32)

    hp = jax.lax.Precision.HIGHEST
    B, C, Himg, Wimg = x.shape
    xp = x.reshape(B, C, 8, Himg // 8, 8, Wimg // 8).mean(axis=(3, 5))
    feat = xp.reshape(B, C * 64)
    gf = jnp.maximum(jnp.dot(bfr(feat), bfr(raw["Wfe"]), precision=hp) + raw["bfe"], 0.0)

    def gate(p):
        h = jnp.maximum(jnp.dot(bfr(gf), bfr(p["W1"]), precision=hp) + p["b1"], 0.0)
        return jax.nn.softmax(jnp.dot(bfr(h), bfr(p["W2"]), precision=hp) + p["b2"], axis=1)

    fw, cw, nw = gate(raw["food_g"]), gate(raw["cuis_g"]), gate(raw["nutr_g"])

    pooled = x.mean(axis=(2, 3))
    fp = jnp.stack([jnp.dot(bfr(pooled), bfr(m["Wf"]), precision=hp) + m["bf"][0]
                    for m in raw["models"]])
    cp = jnp.stack([jnp.dot(bfr(pooled), bfr(m["Wc"]), precision=hp) + m["bc"][0]
                    for m in raw["models"]])
    nprd = jnp.stack([jnp.dot(bfr(pooled), bfr(m["Wn"]), precision=hp) + m["bn"][0]
                      for m in raw["models"]])

    food = jnp.einsum("bm,mbc->bc", fw, fp, precision=hp)
    cuis = jnp.einsum("bm,mbc->bc", cw, cp, precision=hp)
    nutr = jnp.einsum("bm,mbc->bc", nw, nprd, precision=hp)

    eps = 1e-8
    p = jnp.clip(fw, eps, 1.0 - eps)
    ent = jnp.mean(-jnp.sum(p * jnp.log(p), axis=1))
    return food, cuis, nutr, fw, cw, nw, ent


if __name__ == "__main__":
    key = jax.random.PRNGKey(0)
    kx, kp = jax.random.split(key)

    # small shapes consistent with the module: B=2, 3-channel 16x16 image
    x = jax.random.normal(kx, (2, 3, 16, 16), dtype=jnp.float32)
    raw = init_params(kp)
    packed = pack_params(raw)

    outs = adaptive_ensemble_forward(
        x, packed, num_models=3, num_food=16, num_cuisine=8, num_nutrition=4)
    outs = jax.block_until_ready(outs)

    refs = reference_forward(x, raw)
    for got, ref in zip(outs, refs):
        np.testing.assert_allclose(np.asarray(got), np.asarray(ref),
                                   rtol=2e-3, atol=1e-4)

    print("KERNEL_OK")
</pallas_src>

<mosaic_0001>
module attributes {stable_mosaic.version = 11 : i64} {
  func.func @kernel(%arg0: i32, %arg1: memref<2x192xf32, #tpu.memory_space<vmem>>, %arg2: memref<2x3xf32, #tpu.memory_space<vmem>>, %arg3: memref<192x128xbf16, #tpu.memory_space<vmem>>, %arg4: memref<1x128xf32, #tpu.memory_space<vmem>>, %arg5: memref<128x192xbf16, #tpu.memory_space<vmem>>, %arg6: memref<1x192xf32, #tpu.memory_space<vmem>>, %arg7: memref<192x9xbf16, #tpu.memory_space<vmem>>, %arg8: memref<1x9xf32, #tpu.memory_space<vmem>>, %arg9: memref<3x84xbf16, #tpu.memory_space<vmem>>, %arg10: memref<1x84xf32, #tpu.memory_space<vmem>>, %arg11: memref<2x128xf32, #tpu.memory_space<vmem>>) attributes {dimension_semantics = [#tpu.dimension_semantics<parallel>], iteration_bounds = array<i64: 1>, scalar_prefetch = 0 : i64, scratch_operands = 0 : i64, tpu.core_type = #tpu.core_type<tc>, window_params = [{transform_indices = @transform_0, window_bounds = array<i64: 2, 192>}, {transform_indices = @transform_1, window_bounds = array<i64: 2, 3>}, {pipeline_mode = #tpu.pipeline_mode<synchronous>, transform_indices = @transform_2, window_bounds = array<i64: 192, 128>}, {pipeline_mode = #tpu.pipeline_mode<synchronous>, transform_indices = @transform_3, window_bounds = array<i64: 1, 128>}, {pipeline_mode = #tpu.pipeline_mode<synchronous>, transform_indices = @transform_4, window_bounds = array<i64: 128, 192>}, {pipeline_mode = #tpu.pipeline_mode<synchronous>, transform_indices = @transform_5, window_bounds = array<i64: 1, 192>}, {pipeline_mode = #tpu.pipeline_mode<synchronous>, transform_indices = @transform_6, window_bounds = array<i64: 192, 9>}, {pipeline_mode = #tpu.pipeline_mode<synchronous>, transform_indices = @transform_7, window_bounds = array<i64: 1, 9>}, {pipeline_mode = #tpu.pipeline_mode<synchronous>, transform_indices = @transform_8, window_bounds = array<i64: 3, 84>}, {pipeline_mode = #tpu.pipeline_mode<synchronous>, transform_indices = @transform_9, window_bounds = array<i64: 1, 84>}, {transform_indices = @transform_10, window_bounds = array<i64: 2, 128>}]} {
    %c0 = arith.constant 0 : index
    %c0_0 = arith.constant 0 : index
    %0 = vector.load %arg1[%c0, %c0_0] : memref<2x192xf32, #tpu.memory_space<vmem>>, vector<2x192xf32>
    %1 = arith.truncf %0 : vector<2x192xf32> to vector<2x192xbf16>
    %c0_1 = arith.constant 0 : index
    %c0_2 = arith.constant 0 : index
    %2 = vector.load %arg3[%c0_1, %c0_2] : memref<192x128xbf16, #tpu.memory_space<vmem>>, vector<192x128xbf16>
    %cst = arith.constant dense<0.000000e+00> : vector<2x128xf32>
    %3 = tpu.matmul %1, %2, %cst {dimension_numbers = #tpu.dot_dimension_numbers<[1], [0], [0], [1], [0, 0, 1, 1], [], []>} : vector<2x192xbf16>, vector<192x128xbf16>, vector<2x128xf32> -> vector<2x128xf32>
    %c0_3 = arith.constant 0 : index
    %c0_4 = arith.constant 0 : index
    %4 = vector.load %arg4[%c0_3, %c0_4] : memref<1x128xf32, #tpu.memory_space<vmem>>, vector<1x128xf32>
    %5 = vector.broadcast %4 : vector<1x128xf32> to vector<2x128xf32>
    %6 = arith.addf %3, %5 : vector<2x128xf32>
    %cst_5 = arith.constant 0.000000e+00 : f32
    %7 = vector.broadcast %cst_5 : f32 to vector<2x128xf32>
    %8 = arith.maximumf %6, %7 : vector<2x128xf32>
    %9 = arith.truncf %8 : vector<2x128xf32> to vector<2x128xbf16>
    %c0_6 = arith.constant 0 : index
    %c0_7 = arith.constant 0 : index
    %10 = vector.load %arg5[%c0_6, %c0_7] : memref<128x192xbf16, #tpu.memory_space<vmem>>, vector<128x192xbf16>
    %cst_8 = arith.constant dense<0.000000e+00> : vector<2x192xf32>
    %11 = tpu.matmul %9, %10, %cst_8 {dimension_numbers = #tpu.dot_dimension_numbers<[1], [0], [0], [1], [0, 0, 1, 1], [], []>} : vector<2x128xbf16>, vector<128x192xbf16>, vector<2x192xf32> -> vector<2x192xf32>
    %c0_9 = arith.constant 0 : index
    %c0_10 = arith.constant 0 : index
    %12 = vector.load %arg6[%c0_9, %c0_10] : memref<1x192xf32, #tpu.memory_space<vmem>>, vector<1x192xf32>
    %13 = vector.broadcast %12 : vector<1x192xf32> to vector<2x192xf32>
    %14 = arith.addf %11, %13 : vector<2x192xf32>
    %cst_11 = arith.constant 0.000000e+00 : f32
    %15 = vector.broadcast %cst_11 : f32 to vector<2x192xf32>
    %16 = arith.maximumf %14, %15 : vector<2x192xf32>
    %17 = arith.truncf %16 : vector<2x192xf32> to vector<2x192xbf16>
    %c0_12 = arith.constant 0 : index
    %c0_13 = arith.constant 0 : index
    %18 = vector.load %arg7[%c0_12, %c0_13] : memref<192x9xbf16, #tpu.memory_space<vmem>>, vector<192x9xbf16>
    %cst_14 = arith.constant dense<0.000000e+00> : vector<2x9xf32>
    %19 = tpu.matmul %17, %18, %cst_14 {dimension_numbers = #tpu.dot_dimension_numbers<[1], [0], [0], [1], [0, 0, 1, 1], [], []>} : vector<2x192xbf16>, vector<192x9xbf16>, vector<2x9xf32> -> vector<2x9xf32>
    %c0_15 = arith.constant 0 : index
    %c0_16 = arith.constant 0 : index
    %20 = vector.load %arg8[%c0_15, %c0_16] : memref<1x9xf32, #tpu.memory_space<vmem>>, vector<1x9xf32>
    %21 = vector.broadcast %20 : vector<1x9xf32> to vector<2x9xf32>
    %22 = arith.addf %19, %21 : vector<2x9xf32>
    %23 = vector.extract_strided_slice %22 {offsets = [0, 0], sizes = [2, 3], strides = [1, 1]} : vector<2x9xf32> to vector<2x3xf32>
    %cst_17 = arith.constant dense<0xFF800000> : vector<2xf32>
    %24 = vector.multi_reduction <maximumf>, %23, %cst_17 [1] : vector<2x3xf32> to vector<2xf32>
    %25 = vector.shape_cast %24 : vector<2xf32> to vector<2x1xf32>
    %26 = vector.broadcast %25 : vector<2x1xf32> to vector<2x3xf32>
    %27 = arith.subf %23, %26 : vector<2x3xf32>
    %28 = math.exp %27 : vector<2x3xf32>
    %cst_18 = arith.constant dense<0.000000e+00> : vector<2xf32>
    %29 = vector.multi_reduction <add>, %28, %cst_18 [1] : vector<2x3xf32> to vector<2xf32>
    %30 = vector.shape_cast %29 : vector<2xf32> to vector<2x1xf32>
    %31 = tpu.reciprocal %30 : vector<2x1xf32> -> vector<2x1xf32>
    %32 = vector.broadcast %31 : vector<2x1xf32> to vector<2x3xf32>
    %33 = arith.mulf %28, %32 : vector<2x3xf32>
    %34 = vector.extract_strided_slice %22 {offsets = [0, 3], sizes = [2, 3], strides = [1, 1]} : vector<2x9xf32> to vector<2x3xf32>
    %cst_19 = arith.constant dense<0xFF800000> : vector<2xf32>
    %35 = vector.multi_reduction <maximumf>, %34, %cst_19 [1] : vector<2x3xf32> to vector<2xf32>
    %36 = vector.shape_cast %35 : vector<2xf32> to vector<2x1xf32>
    %37 = vector.broadcast %36 : vector<2x1xf32> to vector<2x3xf32>
    %38 = arith.subf %34, %37 : vector<2x3xf32>
    %39 = math.exp %38 : vector<2x3xf32>
    %cst_20 = arith.constant dense<0.000000e+00> : vector<2xf32>
    %40 = vector.multi_reduction <add>, %39, %cst_20 [1] : vector<2x3xf32> to vector<2xf32>
    %41 = vector.shape_cast %40 : vector<2xf32> to vector<2x1xf32>
    %42 = tpu.reciprocal %41 : vector<2x1xf32> -> vector<2x1xf32>
    %43 = vector.broadcast %42 : vector<2x1xf32> to vector<2x3xf32>
    %44 = arith.mulf %39, %43 : vector<2x3xf32>
    %45 = vector.extract_strided_slice %22 {offsets = [0, 6], sizes = [2, 3], strides = [1, 1]} : vector<2x9xf32> to vector<2x3xf32>
    %cst_21 = arith.constant dense<0xFF800000> : vector<2xf32>
    %46 = vector.multi_reduction <maximumf>, %45, %cst_21 [1] : vector<2x3xf32> to vector<2xf32>
    %47 = vector.shape_cast %46 : vector<2xf32> to vector<2x1xf32>
    %48 = vector.broadcast %47 : vector<2x1xf32> to vector<2x3xf32>
    %49 = arith.subf %45, %48 : vector<2x3xf32>
    %50 = math.exp %49 : vector<2x3xf32>
    %cst_22 = arith.constant dense<0.000000e+00> : vector<2xf32>
    %51 = vector.multi_reduction <add>, %50, %cst_22 [1] : vector<2x3xf32> to vector<2xf32>
    %52 = vector.shape_cast %51 : vector<2xf32> to vector<2x1xf32>
    %53 = tpu.reciprocal %52 : vector<2x1xf32> -> vector<2x1xf32>
    %54 = vector.broadcast %53 : vector<2x1xf32> to vector<2x3xf32>
    %55 = arith.mulf %50, %54 : vector<2x3xf32>
    %c0_23 = arith.constant 0 : index
    %c0_24 = arith.constant 0 : index
    %56 = vector.load %arg2[%c0_23, %c0_24] : memref<2x3xf32, #tpu.memory_space<vmem>>, vector<2x3xf32>
    %57 = arith.truncf %56 : vector<2x3xf32> to vector<2x3xbf16>
    %c0_25 = arith.constant 0 : index
    %c0_26 = arith.constant 0 : index
    %58 = vector.load %arg9[%c0_25, %c0_26] : memref<3x84xbf16, #tpu.memory_space<vmem>>, vector<3x84xbf16>
    %cst_27 = arith.constant dense<0.000000e+00> : vector<2x84xf32>
    %59 = tpu.matmul %57, %58, %cst_27 {dimension_numbers = #tpu.dot_dimension_numbers<[1], [0], [0], [1], [0, 0, 1, 1], [], []>} : vector<2x3xbf16>, vector<3x84xbf16>, vector<2x84xf32> -> vector<2x84xf32>
    %c0_28 = arith.constant 0 : index
    %c0_29 = arith.constant 0 : index
    %60 = vector.load %arg10[%c0_28, %c0_29] : memref<1x84xf32, #tpu.memory_space<vmem>>, vector<1x84xf32>
    %61 = vector.broadcast %60 : vector<1x84xf32> to vector<2x84xf32>
    %62 = arith.addf %59, %61 : vector<2x84xf32>
    %63 = vector.extract_strided_slice %33 {offsets = [0, 0], sizes = [2, 1], strides = [1, 1]} : vector<2x3xf32> to vector<2x1xf32>
    %64 = vector.extract_strided_slice %62 {offsets = [0, 0], sizes = [2, 16], strides = [1, 1]} : vector<2x84xf32> to vector<2x16xf32>
    %65 = vector.broadcast %63 : vector<2x1xf32> to vector<2x16xf32>
    %66 = arith.mulf %65, %64 : vector<2x16xf32>
    %67 = vector.extract_strided_slice %33 {offsets = [0, 1], sizes = [2, 1], strides = [1, 1]} : vector<2x3xf32> to vector<2x1xf32>
    %68 = vector.extract_strided_slice %62 {offsets = [0, 28], sizes = [2, 16], strides = [1, 1]} : vector<2x84xf32> to vector<2x16xf32>
    %69 = vector.broadcast %67 : vector<2x1xf32> to vector<2x16xf32>
    %70 = arith.mulf %69, %68 : vector<2x16xf32>
    %71 = arith.addf %66, %70 : vector<2x16xf32>
    %72 = vector.extract_strided_slice %33 {offsets = [0, 2], sizes = [2, 1], strides = [1, 1]} : vector<2x3xf32> to vector<2x1xf32>
    %73 = vector.extract_strided_slice %62 {offsets = [0, 56], sizes = [2, 16], strides = [1, 1]} : vector<2x84xf32> to vector<2x16xf32>
    %74 = vector.broadcast %72 : vector<2x1xf32> to vector<2x16xf32>
    %75 = arith.mulf %74, %73 : vector<2x16xf32>
    %76 = arith.addf %71, %75 : vector<2x16xf32>
    %77 = vector.extract_strided_slice %44 {offsets = [0, 0], sizes = [2, 1], strides = [1, 1]} : vector<2x3xf32> to vector<2x1xf32>
    %78 = vector.extract_strided_slice %62 {offsets = [0, 16], sizes = [2, 8], strides = [1, 1]} : vector<2x84xf32> to vector<2x8xf32>
    %79 = vector.broadcast %77 : vector<2x1xf32> to vector<2x8xf32>
    %80 = arith.mulf %79, %78 : vector<2x8xf32>
    %81 = vector.extract_strided_slice %44 {offsets = [0, 1], sizes = [2, 1], strides = [1, 1]} : vector<2x3xf32> to vector<2x1xf32>
    %82 = vector.extract_strided_slice %62 {offsets = [0, 44], sizes = [2, 8], strides = [1, 1]} : vector<2x84xf32> to vector<2x8xf32>
    %83 = vector.broadcast %81 : vector<2x1xf32> to vector<2x8xf32>
    %84 = arith.mulf %83, %82 : vector<2x8xf32>
    %85 = arith.addf %80, %84 : vector<2x8xf32>
    %86 = vector.extract_strided_slice %44 {offsets = [0, 2], sizes = [2, 1], strides = [1, 1]} : vector<2x3xf32> to vector<2x1xf32>
    %87 = vector.extract_strided_slice %62 {offsets = [0, 72], sizes = [2, 8], strides = [1, 1]} : vector<2x84xf32> to vector<2x8xf32>
    %88 = vector.broadcast %86 : vector<2x1xf32> to vector<2x8xf32>
    %89 = arith.mulf %88, %87 : vector<2x8xf32>
    %90 = arith.addf %85, %89 : vector<2x8xf32>
    %91 = vector.extract_strided_slice %55 {offsets = [0, 0], sizes = [2, 1], strides = [1, 1]} : vector<2x3xf32> to vector<2x1xf32>
    %92 = vector.extract_strided_slice %62 {offsets = [0, 24], sizes = [2, 4], strides = [1, 1]} : vector<2x84xf32> to vector<2x4xf32>
    %93 = vector.broadcast %91 : vector<2x1xf32> to vector<2x4xf32>
    %94 = arith.mulf %93, %92 : vector<2x4xf32>
    %95 = vector.extract_strided_slice %55 {offsets = [0, 1], sizes = [2, 1], strides = [1, 1]} : vector<2x3xf32> to vector<2x1xf32>
    %96 = vector.extract_strided_slice %62 {offsets = [0, 52], sizes = [2, 4], strides = [1, 1]} : vector<2x84xf32> to vector<2x4xf32>
    %97 = vector.broadcast %95 : vector<2x1xf32> to vector<2x4xf32>
    %98 = arith.mulf %97, %96 : vector<2x4xf32>
    %99 = arith.addf %94, %98 : vector<2x4xf32>
    %100 = vector.extract_strided_slice %55 {offsets = [0, 2], sizes = [2, 1], strides = [1, 1]} : vector<2x3xf32> to vector<2x1xf32>
    %101 = vector.extract_strided_slice %62 {offsets = [0, 80], sizes = [2, 4], strides = [1, 1]} : vector<2x84xf32> to vector<2x4xf32>
    %102 = vector.broadcast %100 : vector<2x1xf32> to vector<2x4xf32>
    %103 = arith.mulf %102, %101 : vector<2x4xf32>
    %104 = arith.addf %99, %103 : vector<2x4xf32>
    %cst_30 = arith.constant 9.99999993E-9 : f32
    %cst_31 = arith.constant 1.000000e+00 : f32
    %105 = vector.broadcast %cst_30 : f32 to vector<2x3xf32>
    %106 = arith.maximumf %105, %33 : vector<2x3xf32>
    %107 = vector.broadcast %cst_31 : f32 to vector<2x3xf32>
    %108 = arith.minimumf %107, %106 : vector<2x3xf32>
    %109 = math.log %108 : vector<2x3xf32>
    %110 = arith.mulf %108, %109 : vector<2x3xf32>
    %cst_32 = arith.constant dense<0.000000e+00> : vector<2xf32>
    %111 = vector.multi_reduction <add>, %110, %cst_32 [1] : vector<2x3xf32> to vector<2xf32>
    %112 = vector.shape_cast %111 : vector<2xf32> to vector<2x1xf32>
    %cst_33 = arith.constant 0.000000e+00 : f32
    %113 = vector.broadcast %cst_33 : f32 to vector<2x1xf32>
    %114 = arith.subf %113, %112 : vector<2x1xf32>
    %cst_34 = arith.constant 0.000000e+00 : f32
    %115 = vector.broadcast %cst_34 : f32 to vector<2x90xf32>
    %116 = tpu.concatenate %76, %90, %104, %33, %44, %55, %114, %115 in 1 : vector<2x16xf32>, vector<2x8xf32>, vector<2x4xf32>, vector<2x3xf32>, vector<2x3xf32>, vector<2x3xf32>, vector<2x1xf32>, vector<2x90xf32> -> vector<2x128xf32>
    %c0_35 = arith.constant 0 : index
    %c0_36 = arith.constant 0 : index
    %117 = vector.load %arg11[%c0_35, %c0_36] : memref<2x128xf32, #tpu.memory_space<vmem>>, vector<2x128xf32>
    tpu.vector_store %arg11[%c0_35, %c0_36], %116 {strides = array<i32>} : memref<2x128xf32, #tpu.memory_space<vmem>>, vector<2x128xf32>,
    return
  }
  func.func @transform_0(%arg0: i32) -> (i32, i32) {
    %c0_i32 = arith.constant 0 : i32
    %c0_i32_0 = arith.constant 0 : i32
    return %arg0, %c0_i32 : i32, i32
  }
  func.func @transform_1(%arg0: i32) -> (i32, i32) {
    %c0_i32 = arith.constant 0 : i32
    %c0_i32_0 = arith.constant 0 : i32
    return %arg0, %c0_i32 : i32, i32
  }
  func.func @transform_2(%arg0: i32) -> (i32, i32) {
    %c0_i32 = arith.constant 0 : i32
    %c0_i32_0 = arith.constant 0 : i32
    %c0_i32_1 = arith.constant 0 : i32
    return %c0_i32, %c0_i32_0 : i32, i32
  }
  func.func @transform_3(%arg0: i32) -> (i32, i32) {
    %c0_i32 = arith.constant 0 : i32
    %c0_i32_0 = arith.constant 0 : i32
    %c0_i32_1 = arith.constant 0 : i32
    return %c0_i32, %c0_i32_0 : i32, i32
  }
  func.func @transform_4(%arg0: i32) -> (i32, i32) {
    %c0_i32 = arith.constant 0 : i32
    %c0_i32_0 = arith.constant 0 : i32
    %c0_i32_1 = arith.constant 0 : i32
    return %c0_i32, %c0_i32_0 : i32, i32
  }
  func.func @transform_5(%arg0: i32) -> (i32, i32) {
    %c0_i32 = arith.constant 0 : i32
    %c0_i32_0 = arith.constant 0 : i32
    %c0_i32_1 = arith.constant 0 : i32
    return %c0_i32, %c0_i32_0 : i32, i32
  }
  func.func @transform_6(%arg0: i32) -> (i32, i32) {
    %c0_i32 = arith.constant 0 : i32
    %c0_i32_0 = arith.constant 0 : i32
    %c0_i32_1 = arith.constant 0 : i32
    return %c0_i32, %c0_i32_0 : i32, i32
  }
  func.func @transform_7(%arg0: i32) -> (i32, i32) {
    %c0_i32 = arith.constant 0 : i32
    %c0_i32_0 = arith.constant 0 : i32
    %c0_i32_1 = arith.constant 0 : i32
    return %c0_i32, %c0_i32_0 : i32, i32
  }
  func.func @transform_8(%arg0: i32) -> (i32, i32) {
    %c0_i32 = arith.constant 0 : i32
    %c0_i32_0 = arith.constant 0 : i32
    %c0_i32_1 = arith.constant 0 : i32
    return %c0_i32, %c0_i32_0 : i32, i32
  }
  func.func @transform_9(%arg0: i32) -> (i32, i32) {
    %c0_i32 = arith.constant 0 : i32
    %c0_i32_0 = arith.constant 0 : i32
    %c0_i32_1 = arith.constant 0 : i32
    return %c0_i32, %c0_i32_0 : i32, i32
  }
  func.func @transform_10(%arg0: i32) -> (i32, i32) {
    %c0_i32 = arith.constant 0 : i32
    %c0_i32_0 = arith.constant 0 : i32
    return %arg0, %c0_i32 : i32, i32
  }
}

</mosaic_0001>

<bundles_post_ra>
// kernel: tpu_custom_call.1
= control target key start
LH: loop header
LB: loop body
LE: loop exit
PB: predicated region body
PF: predicated region fallthrough
CT: control target
= control target key end

     0   :  { %s1240_s0 = inlined_call_operand.vmem [shape: f32[2,192], index: 0, kind: input, shape index: {}]   ;;  %s1241_s1 = inlined_call_operand.vmem [shape: f32[2,3], index: 1, kind: input, shape index: {}]   ;;  %s1242_s2 = inlined_call_operand.vmem [shape: bf16[192,128], index: 2, kind: input, shape index: {}]   ;;  %s1243_s3 = inlined_call_operand.vmem [shape: f32[1,128], index: 3, kind: input, shape index: {}]   ;;  %s1244_s4 = inlined_call_operand.vmem [shape: bf16[128,192], index: 4, kind: input, shape index: {}]   ;;  %s1245_s5 = inlined_call_operand.vmem [shape: f32[1,192], index: 5, kind: input, shape index: {}]   ;;  %s1246_s6 = inlined_call_operand.vmem [shape: bf16[192,9], index: 6, kind: input, shape index: {}]   ;;  %s1247_s7 = inlined_call_operand.vmem [shape: f32[1,9], index: 7, kind: input, shape index: {}]   ;;  %s1248_s8 = inlined_call_operand.vmem [shape: bf16[3,84], index: 8, kind: input, shape index: {}]   ;;  %s1249_s9 = inlined_call_operand.vmem [shape: f32[1,84], index: 9, kind: input, shape index: {}]   ;;  %s1250_s10 = inlined_call_operand.hbm [shape: f32[2,128], index: 10, kind: output, shape index: {}]  }
   0x1   :  { %v850_v0 = vld [vmem:[%s1242_s2 + $0x38] sm:$0xff]  ;;  %v849_v2 = vld [vmem:[%s1242_s2 + $0x30] sm:$0xff]  ;;  %v37_v4 = vld [vmem:[%s1240_s0] sm:$0xf] }
   0x2   :  { %v854_v1 = vld [vmem:[%s1242_s2 + $0x58] sm:$0xff]  ;;  %150 = vmatpush.bf16.msra.mxu0 %v850_v0  ;;  %v853_v3 = vld [vmem:[%s1242_s2 + $0x50] sm:$0xff]  ;;  %v848_v5 = vld [vmem:[%s1242_s2 + $0x28] sm:$0xff]  ;;  %39 = vst [vmem:[#allocation1] ss:$4 sm:$0xff] %v37_v4 }
   0x3   :  { %167 = vmatpush.bf16.msra.mxu1 %v854_v1  ;;  %v787_v6 = vld [vmem:[%s1244_s4 + $0x70] sm:$0xf]  ;;  %v870_v7 = vld [vmem:[%s1244_s4 + $0x74] sm:$0xf0]  ;;  %v869_v8 = vld [vmem:[%s1244_s4 + $0x74] sm:$0xf] }
   0x4   :  { %v789_v9 = vld [vmem:[%s1244_s4 + $0x78] sm:$0xf0]  ;;  %v788_v10 = vor.u32 %v870_v7, %v787_v6  ;;  %v779_v12 = vld [vmem:[%s1244_s4 + $0x60] sm:$0xf]  ;;  %v868_v13 = vld [vmem:[%s1244_s4 + $0x64] sm:$0xf0] }
   0x5   :  { %v792_v11 = vor.u32 %v869_v8, %v789_v9  ;;  %v867_v14 = vld [vmem:[%s1244_s4 + $0x64] sm:$0xf]  ;;  %v852_v15 = vld [vmem:[%s1242_s2 + $0x48] sm:$0xff]  ;;  %v780_v18 = vor.u32 %v868_v13, %v779_v12  ;;  %v771_v20 = vld [vmem:[%s1244_s4 + $0x50] sm:$0xf] }
   0x6   :  { %151 = vmatpush.bf16.msra.mxu0 %v849_v2  ;;  %v781_v16 = vld [vmem:[%s1244_s4 + $0x68] sm:$0xf0]  ;;  %v847_v17 = vld [vmem:[%s1242_s2 + $0x20] sm:$0xff]  ;;  %280 = vmatpush.bf16.msra.mxu2 %v788_v10  ;;  %v866_v21 = vld [vmem:[%s1244_s4 + $0x54] sm:$0xf0] }
   0x7   :  { %168 = vmatpush.bf16.msra.mxu1 %v853_v3  ;;  %293 = vmatpush.bf16.msra.mxu3 %v792_v11  ;;  %v784_v19 = vor.u32 %v867_v14, %v781_v16  ;;  %v865_v22 = vld [vmem:[%s1244_s4 + $0x54] sm:$0xf]  ;;  %v773_v23 = vld [vmem:[%s1244_s4 + $0x58] sm:$0xf0]  ;;  %v851_v24 = vld [vmem:[%s1242_s2 + $0x40] sm:$0xff]  ;;  %v772_v26 = vor.u32 %v866_v21, %v771_v20 }
   0x8   :  { %v776_v27 = vor.u32 %v865_v22, %v773_v23  ;;  %v763_v28 = vld [vmem:[%s1244_s4 + $0x40] sm:$0xf] }
   0x9   :  { %v41_v25 = vld.sshfl [vmem:[#allocation1 + $0x8] sm:$0xff pattern:$0x73625140] }
   0xa   :  { %152 = vmatpush.bf16.msra.mxu0 %v848_v5  ;;  %281 = vmatpush.bf16.msra.mxu2 %v780_v18 }
   0xb   :  { %169 = vmatpush.bf16.msra.mxu1 %v852_v15  ;;  %294 = vmatpush.bf16.msra.mxu3 %v784_v19 }
   0xc   :  { %15 = vsyncpa [#allocation3], 0  ;;  %v864_v29 = vld [vmem:[%s1244_s4 + $0x44] sm:$0xf0]  ;;  %v863_v30 = vld [vmem:[%s1244_s4 + $0x44] sm:$0xf]  ;;  %v45_v33 = vpack.c.bf16 %v41_v25, %v41_v25 }
   0xd   :  { %v765_v31 = vld [vmem:[%s1244_s4 + $0x48] sm:$0xf0]  ;;  %v846_v32 = vld [vmem:[%s1242_s2 + $0x18] sm:$0xff]  ;;  %vm146_vm0 = vcmask 523264   ;;  %v764_v34 = vor.u32 %v864_v29, %v763_v28  ;;  %v845_v36 = vld [vmem:[%s1242_s2 + $0x10] sm:$0xff]  ;;  %vm464_vm1 = vcmask 42008  }
   0xe   :  { %153 = vmatpush.bf16.msra.mxu0 %v847_v17  ;;  %282 = vmatpush.bf16.msra.mxu2 %v772_v26  ;;  %v768_v35 = vor.u32 %v863_v30, %v765_v31  ;;  %v844_v37 = vld [vmem:[%s1242_s2 + $0x8] sm:$0xff]  ;;  %v843_v38 = vld [vmem:[%s1242_s2] sm:$0xff]  ;;  %v755_v41 = vld [vmem:[%s1244_s4 + $0x30] sm:$0xf]  ;;  %vm439_vm2 = vcmask 17408   ;;  %vm493_vm3 = vcmask 66608  }
   0xf   :  { %170 = vmatpush.bf16.msra.mxu1 %v851_v24  ;;  %295 = vmatpush.bf16.msra.mxu3 %v776_v27  ;;  %v40_v39 = vld.sshfl [vmem:[#allocation1] sm:$0xff pattern:$0x73625140]  ;;  %v862_v42 = vld [vmem:[%s1244_s4 + $0x34] sm:$0xf0]  ;;  %v877_v3 = vld [vmem:[%s1246_s6 + $0x30] sm:$0xff] }
  0x10   :  { %v44_v40 = vpack.c.bf16 %v40_v39, %v40_v39  ;;  %v861_v43 = vld [vmem:[%s1244_s4 + $0x34] sm:$0xf]  ;;  %v756_v44 = vor.u32 %v862_v42, %v755_v41  ;;  %v757_v45 = vld [vmem:[%s1244_s4 + $0x38] sm:$0xf0]  ;;  %v747_v46 = vld [vmem:[%s1244_s4 + $0x20] sm:$0xf] }
  0x11   :  { %v860_v47 = vld [vmem:[%s1244_s4 + $0x24] sm:$0xf0]  ;;  %v760_v48 = vor.u32 %v861_v43, %v757_v45  ;;  %v859_v49 = vld [vmem:[%s1244_s4 + $0x24] sm:$0xf]  ;;  %v749_v50 = vld [vmem:[%s1244_s4 + $0x28] sm:$0xf0] }
  0x12   :  { %154 = vmatpush.bf16.msra.mxu0 %v846_v32  ;;  %728 = vmatmul.msk.bf16.vlgmr.msra.gmra.mxu1 %vm146_vm0, %v45_v33  ;;  %v748_v51 = vor.u32 %v860_v47, %v747_v46  ;;  %v752_v52 = vor.u32 %v859_v49, %v749_v50  ;;  %v739_v53 = vld [vmem:[%s1244_s4 + $0x10] sm:$0xf]  ;;  %v858_v54 = vld [vmem:[%s1244_s4 + $0x14] sm:$0xf0]  ;;  %v857_v55 = vld [vmem:[%s1244_s4 + $0x14] sm:$0xf] }
  0x13   :  { %283 = vmatpush.bf16.msra.mxu2 %v764_v34  ;;  %296 = vmatpush.bf16.msra.mxu3 %v768_v35  ;;  %v740_v56 = vor.u32 %v858_v54, %v739_v53  ;;  %v741_v57 = vld [vmem:[%s1244_s4 + $0x18] sm:$0xf0]  ;;  %v731_v59 = vld [vmem:[%s1244_s4] sm:$0xf]  ;;  %v856_v60 = vld [vmem:[%s1244_s4 + $0x4] sm:$0xf0] }
  0x14   :  { %v744_v58 = vor.u32 %v857_v55, %v741_v57  ;;  %v855_v61 = vld [vmem:[%s1244_s4 + $0x4] sm:$0xf]  ;;  %v732_v62 = vor.u32 %v856_v60, %v731_v59  ;;  %v733_v63 = vld [vmem:[%s1244_s4 + $0x8] sm:$0xf0]  ;;  %v878_v1 = vld [vmem:[%s1246_s6 + $0x38] sm:$0xff]  ;;  %vm533_vm4 = vcmask 1040384  }
  0x15   :  { %v736_v0 = vor.u32 %v855_v61, %v733_v63  ;;  %v882_v2 = vld [vmem:[%s1246_s6 + $0x58] sm:$0xff]  ;;  %413 = vmatpush.bf16.msrb.mxu1 %v878_v1  ;;  %v881_v4 = vld [vmem:[%s1246_s6 + $0x50] sm:$0xff]  ;;  %v876_v5 = vld [vmem:[%s1246_s6 + $0x28] sm:$0xff]  ;;  %vm534_vm5 = vcmask 1041408   ;;  %v954_v59 = vmov 65535   ;;  %vm529_vm6 = vcmask 23552  }
  0x16   :  { %155 = vmatpush.bf16.msra.mxu0 %v845_v36  ;;  %v875_v7 = vld [vmem:[%s1246_s6 + $0x20] sm:$0xff]  ;;  %v874_v8 = vld [vmem:[%s1246_s6 + $0x18] sm:$0xff]  ;;  %v873_v10 = vld [vmem:[%s1246_s6 + $0x10] sm:$0xff]  ;;  %v535_v60 = vsel %vm533_vm4, 4294967295, %v954_v59  ;;  %s965_s26 = smov 100   ;;  %s966_s27 = smov 72  }
  0x17   :  { %284 = vmatpush.bf16.msra.mxu2 %v756_v44  ;;  %297 = vmatpush.bf16.msra.mxu3 %v760_v48  ;;  %v909_v11 = vld [vmem:[%s1243_s3] ss:$0 sm:$0xff]  ;;  %v872_v18 = vld [vmem:[%s1246_s6 + $0x8] sm:$0xff]  ;;  %v536_v61 = vsel %vm534_vm5, %v535_v60, 0  ;;  %vm649_vm4 = vcmask 130048   ;;  %vm653_vm5 = vcmask 228352  }
  0x18   :  { %v880_v19 = vld [vmem:[%s1246_s6 + $0x48] sm:$0xff]  ;;  %v871_v20 = vld [vmem:[%s1246_s6] sm:$0xff]  ;;  %s671_s11 = sshll.u32 %s1250_s10, 4  ;;  %s672_s11 = int_to_ptr.hbm [resolvable:$true] %s671_s11 }
  0x19   :  { %414 = vmatpush.bf16.msrb.mxu1 %v877_v3  ;;  %v879_v21 = vld [vmem:[%s1246_s6 + $0x40] sm:$0xff] }
  0x1a   :  { %156 = vmatpush.bf16.msra.mxu0 %v844_v37  ;;  %v194_v22 = vld [vmem:[%s1245_s5] sm:$0x3]  ;;  %s952_s5 = smov 125  }
  0x1b   :  { %285 = vmatpush.bf16.msra.mxu2 %v748_v51  ;;  %298 = vmatpush.bf16.msra.mxu3 %v752_v52  ;;  %v196_v23 = vperm.slane %v194_v22, 0  ;;  %v197_v24 = vperm.slane %v194_v22, 1  ;;  %v910_v35 = vld [vmem:[%s1247_s7] ss:$0 sm:$0xff]  ;;  %s953_s7 = smov 122   ;;  %v960_v22 = vmov 5  }
  0x1c   :  { %v522_v3 = vld [vmem:[%s1241_s1] sm:$0x3]  ;;  %s963_s1 = smov 28  }
  0x1d   :  { %415 = vmatpush.bf16.msrb.mxu1 %v876_v5  ;;  %v955_v5 = vmov 1  }
  0x1e   :  { %157 = vmatpush.bf16.msra.mxu0 %v843_v38  ;;  %900 = vset.pattern.permute.xlu1 %v955_v5 }
  0x1f   :  { %286 = vmatpush.bf16.msra.mxu2 %v740_v56  ;;  %299 = vmatpush.bf16.msra.mxu3 %v744_v58  ;;  %v524_v58 = vld [vmem:[%s1248_s8] sm:$0x3] }
  0x21   :  { %158 = vmatmul.bf16.vlgmr.msra.gmra.mxu0 %v44_v40  ;;  %416 = vmatpush.bf16.msrb.mxu1 %v875_v7 }
  0x22   :  { %430 = vmatpush.bf16.msrb.mxu0 %v882_v2 }
  0x23   :  { %287 = vmatpush.bf16.msra.mxu2 %v732_v62  ;;  %300 = vmatpush.bf16.msra.mxu3 %v736_v0  ;;  %v538_v62 = vand.u32 %v536_v61, %v524_v58 }
  0x25   :  { %417 = vmatpush.bf16.msrb.mxu1 %v874_v8 }
  0x26   :  { %431 = vmatpush.bf16.msrb.mxu0 %v881_v4  ;;  %v523_v4 = vpack.c.bf16 %v522_v3, %v522_v3 }
  0x27   :  { %547 = vmatpush.bf16.msrb.mxu2 %v538_v62 }
  0x29   :  { %418 = vmatpush.bf16.msrb.mxu1 %v873_v10 }
  0x2a   :  { %432 = vmatpush.bf16.msrb.mxu0 %v880_v19  ;;  %v957_v19 = vmov 2  }
  0x2d   :  { %419 = vmatpush.bf16.msrb.mxu1 %v872_v18 }
  0x2e   :  { %433 = vmatpush.bf16.msrb.mxu0 %v879_v21  ;;  %v959_v21 = vmov 4  }
  0x31   :  { %420 = vmatpush.bf16.msrb.mxu1 %v871_v20  ;;  %v958_v20 = vmov 3  }
  0x32   :  { %906 = vset.pattern.permute.xlu2 %v958_v20 }
  0x8f   :  { %v172_v6 = vpop.f32.mrf.mxu1 }
  0x97   :  { %v174_v9 = vpop.f32.mrf.mxu1 }
  0x9e   :  { %v159_v12 = vpop.f32.mrf.mxu0 }
  0x9f   :  { %v160_v13 = vadd.f32 %v909_v11, %v159_v12 }
  0xa1   :  { %v173_v14 = vadd.f32 %v172_v6, %v160_v13  ;;  %v956_v6 = vmov 0  }
  0xa2   :  { %899 = vset.pattern.permute.xlu0 %v956_v6 }
  0xa3   :  { %v176_v15 = vmax.f32 %v173_v14, 0.0 }
  0xa5   :  { %v177_v16 = vpack.c.bf16 %v176_v15, %v176_v15 }
  0xa6   :  { %v161_v17 = vpop.f32.mrf.mxu0 }
  0xa7   :  { %288 = vmatmul.bf16.vlgmr.msra.gmra.mxu2 %v177_v16  ;;  %301 = vmatmul.bf16.vlgmr.msra.gmra.mxu3 %v177_v16 }
  0xb7   :  { %842 = vmatmul.msk.bf16.vlgmr.msrb.gmra.mxu2 %vm529_vm6, %v523_v4  ;;  %vm655_vm6 = vcmask 252928  }
 0x12a   :  { %v289_v25 = vpop.f32.mrf.mxu2  ;;  %v302_v26 = vpop.f32.mrf.mxu3 }
 0x12b   :  { %v290_v27 = vadd.f32 %v289_v25, %v196_v23  ;;  %v303_v28 = vadd.f32 %v302_v26, %v197_v24 }
 0x12d   :  { %v306_v29 = vmax.f32 %v290_v27, 0.0  ;;  %v307_v30 = vmax.f32 %v303_v28, 0.0 }
 0x12f   :  { %v308_v31 = vpack.c.bf16 %v306_v29, %v306_v29  ;;  %v309_v32 = vpack.c.bf16 %v307_v30, %v307_v30 }
 0x131   :  { %421 = vmatmul.bf16.vlgmr.msrb.gmra.mxu1 %v308_v31  ;;  %841 = vmatmul.msk.bf16.vlgmr.msrb.gmra.mxu0 %vm146_vm0, %v309_v32 }
 0x132   :  { %v291_v33 = vpop.f32.mrf.mxu2  ;;  %v304_v34 = vpop.f32.mrf.mxu3 }
 0x1ae   :  { %v422_v36 = vpop.f32.mrf.mxu1  ;;  %v435_v37 = vpop.f32.mrf.mxu0 }
 0x1af   :  { %v423_v38 = vadd.f32 %v910_v35, %v422_v36 }
 0x1b1   :  { %v436_v39 = vadd.f32 %v435_v37, %v423_v38 }
 0x1b3   :  { %v465_v40 = vsel %vm464_vm1, %v436_v39, -inf  ;;  %v440_v41 = vsel %vm439_vm2, %v436_v39, -inf  ;;  %v494_v44 = vsel %vm493_vm3, %v436_v39, -inf }
 0x1b4   :  { %466 = vmax.xlane.f32.xlu0 %v465_v40  ;;  %441 = vmax.xlane.f32.xlu1 %v440_v41 }
 0x1b6   :  { %v424_v42 = vpop.f32.mrf.mxu1  ;;  %v437_v43 = vpop.f32.mrf.mxu0 }
 0x1bc   :  { %495 = vmax.xlane.f32.xlu0 %v494_v44 }
 0x227   :  { %v467_v45 = vpop.xlane.xlu0 %466  ;;  %v442_v53 = vpop.xlane.xlu1 %441 }
 0x228   :  { %v468_v46 = vsub.f32 %v436_v39, %v467_v45  ;;  %v443_v54 = vsub.f32 %v436_v39, %v442_v53  ;;  %v911_v53 = vld [vmem:[%s1249_s9] ss:$0 sm:$0xff]  ;;  %s967_s9 = smov [#allocation2]  }
 0x229   :  { %s669_s28 = sshll.u32 %s967_s9, 4  ;;  %s670_s28 = int_to_ptr.vmem [resolvable:$true] %s669_s28 }
 0x22a   :  { %v469_v47 = vmul.f32 1.442695, %v468_v46  ;;  %v444_v55 = vmul.f32 1.442695, %v443_v54 }
 0x22c   :  { %912 = vpow2.f32 %v469_v47  ;;  %v961_v47 = vmov 6  }
 0x22f   :  { %v496_v48 = vpop.xlane.xlu0 %495 }
 0x230   :  { %v497_v49 = vsub.f32 %v436_v39, %v496_v48  ;;  %v962_v48 = vmov 7  }
 0x232   :  { %v1206_v50 = vpop.eup %912  ;;  %v498_v51 = vmul.f32 1.442695, %v497_v49  ;;  %v549_v49 = vpop.f32.mrf.mxu2 }
 0x233   :  { %472 = vrot.lane.b32.xlu1 %v1206_v50, %s952_s5 }
 0x234   :  { %914 = vpow2.f32 %v498_v51 }
 0x235   :  { %916 = vpow2.f32 %v444_v55 }
 0x23a   :  { %v1209_v52 = vpop.eup %914  ;;  %v551_v51 = vpop.f32.mrf.mxu2 }
 0x23b   :  { %501 = vrot.lane.b32.xlu2 %v1209_v52, %s953_s7  ;;  %v917_v56 = vpop.eup %916 }
 0x23c   :  { %v446_v57 = vsel %vm439_vm2, %v917_v56, 0.0 }
 0x264   :  { %447 = vadd.xlane.f32.xlu2 %v446_v57 }
 0x295   :  { %v502_v1 = vpop.permute.xlu2 %501 }
 0x296   :  { %v504_v2 = vsel %vm439_vm2, %v502_v1, 0.0 }
 0x2a5   :  { %v473_v63 = vpop.permute.xlu1 %472 }
 0x2a6   :  { %v475_v0 = vsel %vm439_vm2, %v473_v63, 0.0 }
 0x2a7   :  { %476 = vadd.xlane.f32.xlu0 %v475_v0 }
 0x2af   :  { %505 = vadd.xlane.f32.xlu0 %v504_v2 }
 0x2d7   :  { %v448_v7 = vpop.xlane.xlu2 %447 }
 0x2d8   :  { %918 = vrcp.f32 %v448_v7  ;;  %v460_v11 = vand.u32 2147483648, %v448_v7  ;;  %v458_v13 = vand.u32 2147483647, %v448_v7  ;;  %vm454_vm8 = vweird.f32 %v448_v7 }
 0x2da   :  { %v461_v15 = vor.u32 1.1754944e-38, %v460_v11  ;;  %vm459_vm10 = vcmp.eq.f32.partialorder %v458_v13, 8.507059e+37 }
 0x2de   :  { %v919_v8 = vpop.eup %918 }
 0x2df   :  { %v450_v9 = vmul.f32 %v919_v8, %v448_v7  ;;  %vm455_vm7 = vweird.f32 %v919_v8 }
 0x2e0   :  { %vm456_vm9 = vmor %vm454_vm8, %vm455_vm7  ;;  %vm657_vm7 = vcmask 277504   ;;  %vm659_vm8 = vcmask 302080  }
 0x2e1   :  { %v451_v10 = vsub.f32 1.0, %v450_v9 }
 0x2e3   :  { %v452_v12 = vmul.f32 %v919_v8, %v451_v10 }
 0x2e5   :  { %v453_v14 = vadd.f32 %v919_v8, %v452_v12 }
 0x2e7   :  { %v457_v16 = vsel %vm456_vm9, %v919_v8, %v453_v14  ;;  %vm661_vm9 = vcmask 310272  }
 0x2e8   :  { %v462_v17 = vsel %vm459_vm10, %v461_v15, %v457_v16 }
 0x2e9   :  { %v1221_v18 = vmul.f32 %v917_v56, %v462_v17 }
 0x2eb   :  { %560 = vperm.xlu1 %900, %v1221_v18   ;;  %555 = vperm.xlu0 %899, %v1221_v18   ;;  %v631_v3 = vmax.f32 %v1221_v18, 1e-08 }
 0x2ed   :  { %v632_v4 = vmin.f32 %v631_v3, 1.0 }
 0x2f3   :  { %901 = vset.pattern.permute.xlu1 %v957_v19  ;;  %904 = vset.pattern.permute.xlu0 %v960_v22 }
 0x2f4   :  { %570 = vperm.xlu1 %901, %v1221_v18  }
 0x2fc   :  { %902 = vset.pattern.permute.xlu1 %v959_v21 }
 0x31a   :  { %v477_v23 = vpop.xlane.xlu0 %476 }
 0x31b   :  { %920 = vrcp.f32 %v477_v23  ;;  %v489_v28 = vand.u32 2147483648, %v477_v23  ;;  %v487_v30 = vand.u32 2147483647, %v477_v23  ;;  %vm483_vm12 = vweird.f32 %v477_v23 }
 0x31d   :  { %v490_v33 = vor.u32 1.1754944e-38, %v489_v28  ;;  %vm488_vm14 = vcmp.eq.f32.partialorder %v487_v30, 8.507059e+37 }
 0x321   :  { %v921_v24 = vpop.eup %920 }
 0x322   :  { %v479_v25 = vmul.f32 %v921_v24, %v477_v23  ;;  %v506_v26 = vpop.xlane.xlu0 %505  ;;  %vm484_vm11 = vweird.f32 %v921_v24 }
 0x323   :  { %922 = vrcp.f32 %v506_v26  ;;  %vm485_vm13 = vmor %vm483_vm12, %vm484_vm11  ;;  %v518_v39 = vand.u32 2147483648, %v506_v26  ;;  %v516_v41 = vand.u32 2147483647, %v506_v26  ;;  %vm512_vm0 = vweird.f32 %v506_v26 }
 0x324   :  { %v480_v27 = vsub.f32 1.0, %v479_v25  ;;  %924 = vlog2.f32 %v632_v4 }
 0x325   :  { %v519_v43 = vor.u32 1.1754944e-38, %v518_v39  ;;  %vm517_vm3 = vcmp.eq.f32.partialorder %v516_v41, 8.507059e+37 }
 0x326   :  { %v481_v29 = vmul.f32 %v921_v24, %v480_v27 }
 0x328   :  { %v482_v31 = vadd.f32 %v921_v24, %v481_v29 }
 0x329   :  { %v923_v32 = vpop.eup %922 }
 0x32a   :  { %v508_v34 = vmul.f32 %v923_v32, %v506_v26  ;;  %v486_v35 = vsel %vm485_vm13, %v921_v24, %v482_v31  ;;  %vm513_vm15 = vweird.f32 %v923_v32  ;;  %v925_v5 = vpop.eup %924 }
 0x32b   :  { %v491_v36 = vsel %vm488_vm14, %v490_v33, %v486_v35  ;;  %vm514_vm1 = vmor %vm512_vm0, %vm513_vm15  ;;  %v634_v6 = vmul.f32 0.6931472, %v925_v5 }
 0x32c   :  { %v509_v37 = vsub.f32 1.0, %v508_v34  ;;  %v492_v38 = vmul.f32 %v1206_v50, %v491_v36  ;;  %v964_v50 = vmov 8  }
 0x32d   :  { %v635_v7 = vmul.f32 %v634_v6, %v632_v4 }
 0x32e   :  { %v510_v40 = vmul.f32 %v923_v32, %v509_v37  ;;  %581 = vperm.xlu2 %906, %v492_v38   ;;  %596 = vperm.xlu0 %904, %v492_v38  }
 0x32f   :  { %586 = vperm.xlu1 %902, %v492_v38   ;;  %v636_v8 = vsel %vm439_vm2, %v635_v7, 0.0  ;;  %vm651_vm2 = vcmask 195584  }
 0x330   :  { %v511_v42 = vadd.f32 %v923_v32, %v510_v40 }
 0x332   :  { %v515_v44 = vsel %vm514_vm1, %v923_v32, %v511_v42 }
 0x333   :  { %v520_v45 = vsel %vm517_vm3, %v519_v43, %v515_v44 }
 0x334   :  { %v521_v46 = vmul.f32 %v1209_v52, %v520_v45  ;;  %v550_v52 = vadd.f32 %v911_v53, %v549_v49 }
 0x336   :  { %907 = vset.pattern.permute.xlu0 %v961_v47 }
 0x337   :  { %903 = vset.pattern.permute.xlu1 %v962_v48  ;;  %607 = vperm.xlu0 %907, %v521_v46  }
 0x338   :  { %612 = vperm.xlu1 %903, %v521_v46  }
 0x33f   :  { %643 = vrot.lane.b32.xlu0 %v492_v38, %s963_s1 }
 0x340   :  { %905 = vset.pattern.permute.xlu1 %v964_v50  ;;  %908 = vset.pattern.permute.xlu0 %v964_v50 }
 0x341   :  { %622 = vperm.xlu1 %905, %v521_v46  }
 0x35d   :  { %v561_v54 = vpop.permute.xlu1 %560  ;;  %v556_v58 = vpop.permute.xlu0 %555 }
 0x35e   :  { %v563_v55 = vmul.f32 %v561_v54, %v550_v52  ;;  %v558_v19 = vmul.f32 %v556_v58, %v550_v52 }
 0x360   :  { %565 = vrot.lane.b32.xlu1 %v563_v55, %s965_s26 }
 0x366   :  { %v571_v56 = vpop.permute.xlu1 %570 }
 0x367   :  { %v573_v57 = vmul.f32 %v571_v56, %v550_v52 }
 0x369   :  { %575 = vrot.lane.b32.xlu2 %v573_v57, %s966_s27 }
 0x388   :  { %v582_v9 = vpop.permute.xlu2 %581 }
 0x389   :  { %v584_v16 = vmul.f32 %v582_v9, %v550_v52 }
 0x3a0   :  { %v597_v59 = vpop.permute.xlu0 %596 }
 0x3a1   :  { %v599_v60 = vmul.f32 %v597_v59, %v550_v52  ;;  %v587_v61 = vpop.permute.xlu1 %586 }
 0x3a2   :  { %v589_v62 = vmul.f32 %v587_v61, %v550_v52 }
 0x3a3   :  { %601 = vrot.lane.b32.xlu2 %v599_v60, %s966_s27 }
 0x3a4   :  { %591 = vrot.lane.b32.xlu1 %v589_v62, %s965_s26 }
 0x3a9   :  { %v608_v14 = vpop.permute.xlu0 %607 }
 0x3aa   :  { %v613_v63 = vpop.permute.xlu1 %612 }
 0x3ab   :  { %v615_v0 = vmul.f32 %v613_v63, %v550_v52  ;;  %640 = vrot.lane.b32.xlu2 %v1221_v18, %s963_s1  ;;  %v610_v18 = vmul.f32 %v608_v14, %v550_v52 }
 0x3ad   :  { %617 = vrot.lane.b32.xlu1 %v615_v0, %s965_s26 }
 0x3b1   :  { %v644_v30 = vpop.permute.xlu0 %643 }
 0x3b3   :  { %v623_v1 = vpop.permute.xlu1 %622 }
 0x3b4   :  { %v625_v2 = vmul.f32 %v623_v1, %v550_v52 }
 0x3b6   :  { %627 = vrot.lane.b32.xlu2 %v625_v2, %s966_s27 }
 0x3be   :  { %646 = vrot.lane.b32.xlu2 %v521_v46, %s963_s1 }
 0x3c3   :  { %v576_v10 = vpop.permute.xlu2 %575 }
 0x3d2   :  { %v566_v11 = vpop.permute.xlu1 %565 }
 0x3d3   :  { %v568_v22 = vadd.f32 %v566_v11, %v558_v19 }
 0x3d5   :  { %v578_v26 = vadd.f32 %v576_v10, %v568_v22 }
 0x3d7   :  { %637 = vadd.xlane.f32.xlu1 %v636_v8 }
 0x3fd   :  { %v602_v12 = vpop.permute.xlu2 %601 }
 0x405   :  { %v641_v15 = vpop.permute.xlu2 %640 }
 0x410   :  { %v628_v23 = vpop.permute.xlu2 %627 }
 0x416   :  { %v592_v13 = vpop.permute.xlu1 %591 }
 0x417   :  { %v594_v20 = vadd.f32 %v592_v13, %v584_v16 }
 0x418   :  { %v647_v33 = vpop.permute.xlu2 %646 }
 0x419   :  { %v604_v24 = vadd.f32 %v602_v12, %v594_v20 }
 0x41b   :  { %v650_v27 = vsel %vm649_vm4, %v578_v26, %v604_v24 }
 0x41f   :  { %v618_v17 = vpop.permute.xlu1 %617 }
 0x420   :  { %v620_v21 = vadd.f32 %v618_v17, %v610_v18 }
 0x422   :  { %v630_v25 = vadd.f32 %v628_v23, %v620_v21 }
 0x424   :  { %v652_v28 = vsel %vm651_vm2, %v650_v27, %v630_v25 }
 0x425   :  { %v654_v29 = vsel %vm653_vm5, %v652_v28, %v641_v15 }
 0x426   :  { %v656_v31 = vsel %vm655_vm6, %v654_v29, %v644_v30 }
 0x427   :  { %v658_v35 = vsel %vm657_vm7, %v656_v31, %v647_v33 }
 0x44a   :  { %v638_v32 = vpop.xlane.xlu1 %637 }
 0x44b   :  { %v639_v34 = vsub.f32 0.0, %v638_v32 }
 0x44d   :  { %v660_v36 = vsel %vm659_vm8, %v658_v35, %v639_v34 }
 0x44e   :  { %v662_v37 = vsel %vm661_vm9, %v660_v36, 0.0 }
 0x44f   :  { %663 = vst [vmem:[#allocation2] sm:$0x3] %v662_v37 }
 0x450   :  { %674 = dma.vmem_to_hbm [thread:$0]  %s670_s28, 32, %s672_s11, [#allocation3]  }
 0x451   :  { %950 = dma.done.wait [#allocation3], 32  }
 0x452   :  { %951 = vsyncadd [#allocation3], 4294967264 }
 0x453   :  { %679 = vsyncpa [#allocation3], 1 }

</bundles_post_ra>
